<compile_context>
chip_gen: v7x
topology: tpu7x:2x2x1
jax: 0.10.0
libtpu: 0.0.40
codegen_flags: <defaults>
</compile_context>

<pallas_src>
import jax
import jax.numpy as jnp
from jax.experimental import pallas as pl
from jax.experimental.pallas import tpu as pltpu

LANES = 128
SUBLANES = 8


def _cdiv(a, b):
    return -(-a // b)


def _round_up(a, m):
    return _cdiv(a, m) * m


def _tpu_kind():
    try:
        return jax.devices()[0].device_kind.lower()
    except Exception:
        return ""


def _num_splits(kind):
    # 2 TensorCores per chip only on v7x; elsewhere a split adds overhead.
    return 2 if "v7" in kind else 1


def _max_tile_rows(kind):
    # v5e scoped-VMEM default is 16 MiB -> cap at 2048 rows (10 MiB buffers).
    if "v5 lite" in kind or "v5e" in kind or "v5lite" in kind:
        return 2048
    if "v6" in kind or "v7" in kind:
        return 4096          # 20 MiB of double buffers, fits 32 MiB default
    return 2048              # safe portable default for unknown chips


def _row_align(dtype):
    # sublane multiple for the dtype: 8 for 32-bit, 16 for bf16/fp16, 32 for 8-bit
    itemsize = jnp.dtype(dtype).itemsize
    return SUBLANES * max(1, 4 // max(itemsize, 1))


def _to_slab(x, padded_rows):
    """Flatten to a lane-dense (padded_rows, 128) slab, zero-padded. Zeros
    contribute exactly 0 to both squared-error sums, so no in-kernel mask is
    needed."""
    flat = x.reshape(-1)
    pad = padded_rows * LANES - flat.shape[0]
    if pad:
        flat = jnp.pad(flat, (0, pad))
    return flat.reshape(padded_rows, LANES)


def _fused_loss_kernel(ap_ref, at_ref, aw_ref, lp_ref, lt_ref,
                       out_a_ref, out_l_ref):
    i = pl.program_id(1)          # sequential accumulation axis ("arbitrary")

    # Output blocks have a constant block index along the inner axis, so they
    # stay resident in VMEM and act as the accumulators.
    @pl.when(i == 0)
    def _init():
        out_a_ref[...] = jnp.zeros_like(out_a_ref)
        out_l_ref[...] = jnp.zeros_like(out_l_ref)

    # ---- weighted affinity MSE stream ----
    pa = ap_ref[...].astype(jnp.float32)
    ta = at_ref[...].astype(jnp.float32)
    wa = aw_ref[...].astype(jnp.float32)
    da = pa * wa - ta * wa                       # keep PyTorch op order exactly
    out_a_ref[...] += (da * da).reshape(-1, SUBLANES, LANES).sum(
        axis=0, keepdims=True)

    # ---- plain LSD MSE stream ----
    pls = lp_ref[...].astype(jnp.float32)
    tls = lt_ref[...].astype(jnp.float32)
    dl = pls - tls
    out_l_ref[...] += (dl * dl).reshape(-1, SUBLANES, LANES).sum(
        axis=0, keepdims=True)


def aff_lsd_loss(loss_pred_affs, loss_affs, loss_affs_weights,
                 loss_pred_lsds, loss_lsds):
    n_aff = loss_pred_affs.size
    n_lsd = loss_pred_lsds.size

    kind = _tpu_kind()
    num_splits = _num_splits(kind)
    max_tile = _max_tile_rows(kind)
    align = max(_row_align(x.dtype) for x in
                (loss_pred_affs, loss_affs, loss_affs_weights,
                 loss_pred_lsds, loss_lsds))

    rows_a = max(_cdiv(n_aff, LANES), 1)
    rows_l = max(_cdiv(n_lsd, LANES), 1)

    # Balanced streaming: one shared block count; each stream's tile size is
    # proportional to its row count, so both streams finish together and no
    # DMA step fetches already-exhausted (masked) data.
    num_blocks = max(_cdiv(rows_a, max_tile), _cdiv(rows_l, max_tile), 1)
    num_blocks = num_splits * _cdiv(num_blocks, num_splits)
    inner = num_blocks // num_splits

    tile_a = _round_up(_cdiv(rows_a, num_blocks), align)
    tile_l = _round_up(_cdiv(rows_l, num_blocks), align)
    pad_rows_a = tile_a * num_blocks
    pad_rows_l = tile_l * num_blocks

    ap = _to_slab(loss_pred_affs, pad_rows_a)
    at = _to_slab(loss_affs, pad_rows_a)
    aw = _to_slab(loss_affs_weights, pad_rows_a)
    lp = _to_slab(loss_pred_lsds, pad_rows_l)
    lt = _to_slab(loss_lsds, pad_rows_l)

    def block_map(c, i):
        return (c * inner + i, 0)

    out_a, out_l = pl.pallas_call(
        _fused_loss_kernel,
        out_shape=(
            jax.ShapeDtypeStruct((num_splits, SUBLANES, LANES), jnp.float32),
            jax.ShapeDtypeStruct((num_splits, SUBLANES, LANES), jnp.float32),
        ),
        grid_spec=pltpu.PrefetchScalarGridSpec(
            num_scalar_prefetch=0,
            grid=(num_splits, inner),
            in_specs=[
                pl.BlockSpec((tile_a, LANES), block_map),
                pl.BlockSpec((tile_a, LANES), block_map),
                pl.BlockSpec((tile_a, LANES), block_map),
                pl.BlockSpec((tile_l, LANES), block_map),
                pl.BlockSpec((tile_l, LANES), block_map),
            ],
            out_specs=[
                pl.BlockSpec((1, SUBLANES, LANES), lambda c, i: (c, 0, 0)),
                pl.BlockSpec((1, SUBLANES, LANES), lambda c, i: (c, 0, 0)),
            ],
        ),
        compiler_params=pltpu.CompilerParams(
            dimension_semantics=("parallel", "arbitrary")),
    )(ap, at, aw, lp, lt)

    # Tiny scalar glue: reduce the (num_splits, 8, 128) partials and divide.
    aff_loss = jnp.sum(out_a) / jnp.float32(n_aff)
    lsd_loss = jnp.sum(out_l) / jnp.float32(n_lsd)
    return aff_loss + lsd_loss


if __name__ == "__main__":
    key = jax.random.PRNGKey(0)
    k1, k2, k3, k4, k5 = jax.random.split(key, 5)

    # Affinities: NCHW [2, 4, 16, 16]; LSDs: NCHW [2, 6, 16, 16]
    pred_affs = jax.random.normal(k1, (2, 4, 16, 16), dtype=jnp.float32)
    affs = jax.random.normal(k2, (2, 4, 16, 16), dtype=jnp.float32)
    affs_weights = jax.random.uniform(k3, (2, 4, 16, 16), dtype=jnp.float32)
    pred_lsds = jax.random.normal(k4, (2, 6, 16, 16), dtype=jnp.float32)
    lsds = jax.random.normal(k5, (2, 6, 16, 16), dtype=jnp.float32)

    out = aff_lsd_loss(pred_affs, affs, affs_weights, pred_lsds, lsds)
    out = jax.block_until_ready(out)

    # correctness check against a pure-JAX reference
    ref = (jnp.mean((pred_affs * affs_weights - affs * affs_weights) ** 2)
           + jnp.mean((pred_lsds - lsds) ** 2))
    assert jnp.allclose(out, ref, rtol=1e-5, atol=1e-5), (out, ref)

    print("KERNEL_OK")
</pallas_src>

<mosaic_0001>
module attributes {stable_mosaic.version = 11 : i64} {
  func.func @_fused_loss_kernel(%arg0: i32, %arg1: i32, %arg2: memref<16x128xf32, #tpu.memory_space<vmem>>, %arg3: memref<16x128xf32, #tpu.memory_space<vmem>>, %arg4: memref<16x128xf32, #tpu.memory_space<vmem>>, %arg5: memref<24x128xf32, #tpu.memory_space<vmem>>, %arg6: memref<24x128xf32, #tpu.memory_space<vmem>>, %arg7: memref<1x8x128xf32, #tpu.memory_space<vmem>>, %arg8: memref<1x8x128xf32, #tpu.memory_space<vmem>>) attributes {dimension_semantics = [#tpu.dimension_semantics<parallel>, #tpu.dimension_semantics<arbitrary>], iteration_bounds = array<i64: 1, 1>, scalar_prefetch = 0 : i64, scratch_operands = 0 : i64, tpu.core_type = #tpu.core_type<tc>, window_params = [{transform_indices = @transform_0, window_bounds = array<i64: 16, 128>}, {transform_indices = @transform_1, window_bounds = array<i64: 16, 128>}, {transform_indices = @transform_2, window_bounds = array<i64: 16, 128>}, {transform_indices = @transform_3, window_bounds = array<i64: 24, 128>}, {transform_indices = @transform_4, window_bounds = array<i64: 24, 128>}, {transform_indices = @transform_5, window_bounds = array<i64: 1, 8, 128>}, {transform_indices = @transform_6, window_bounds = array<i64: 1, 8, 128>}]} {
    %c0_i32 = arith.constant 0 : i32
    %0 = arith.cmpi eq, %arg1, %c0_i32 : i32
    %1 = arith.extui %0 : i1 to i32
    %c0_i32_0 = arith.constant 0 : i32
    %2 = arith.cmpi ne, %1, %c0_i32_0 : i32
    scf.if %2 {
      %cst_23 = arith.constant 0.000000e+00 : f32
      %26 = vector.broadcast %cst_23 : f32 to vector<1x8x128xf32>
      %c0_24 = arith.constant 0 : index
      %c0_25 = arith.constant 0 : index
      %c0_26 = arith.constant 0 : index
      %27 = vector.load %arg7[%c0_24, %c0_25, %c0_26] : memref<1x8x128xf32, #tpu.memory_space<vmem>>, vector<1x8x128xf32>
      tpu.vector_store %arg7[%c0_24, %c0_25, %c0_26], %26 {strides = array<i32>} : memref<1x8x128xf32, #tpu.memory_space<vmem>>, vector<1x8x128xf32>,
      %cst_27 = arith.constant 0.000000e+00 : f32
      %28 = vector.broadcast %cst_27 : f32 to vector<1x8x128xf32>
      %c0_28 = arith.constant 0 : index
      %c0_29 = arith.constant 0 : index
      %c0_30 = arith.constant 0 : index
      %29 = vector.load %arg8[%c0_28, %c0_29, %c0_30] : memref<1x8x128xf32, #tpu.memory_space<vmem>>, vector<1x8x128xf32>
      tpu.vector_store %arg8[%c0_28, %c0_29, %c0_30], %28 {strides = array<i32>} : memref<1x8x128xf32, #tpu.memory_space<vmem>>, vector<1x8x128xf32>,
    } else {
    }
    %c0 = arith.constant 0 : index
    %c0_1 = arith.constant 0 : index
    %3 = vector.load %arg2[%c0, %c0_1] : memref<16x128xf32, #tpu.memory_space<vmem>>, vector<16x128xf32>
    %c0_2 = arith.constant 0 : index
    %c0_3 = arith.constant 0 : index
    %4 = vector.load %arg3[%c0_2, %c0_3] : memref<16x128xf32, #tpu.memory_space<vmem>>, vector<16x128xf32>
    %c0_4 = arith.constant 0 : index
    %c0_5 = arith.constant 0 : index
    %5 = vector.load %arg4[%c0_4, %c0_5] : memref<16x128xf32, #tpu.memory_space<vmem>>, vector<16x128xf32>
    %6 = arith.mulf %3, %5 : vector<16x128xf32>
    %7 = arith.mulf %4, %5 : vector<16x128xf32>
    %8 = arith.subf %6, %7 : vector<16x128xf32>
    %c0_6 = arith.constant 0 : index
    %c0_7 = arith.constant 0 : index
    %c0_8 = arith.constant 0 : index
    %9 = vector.load %arg7[%c0_6, %c0_7, %c0_8] : memref<1x8x128xf32, #tpu.memory_space<vmem>>, vector<1x8x128xf32>
    %10 = arith.mulf %8, %8 : vector<16x128xf32>
    %11 = vector.shape_cast %10 : vector<16x128xf32> to vector<2x8x128xf32>
    %cst = arith.constant dense<0.000000e+00> : vector<8x128xf32>
    %12 = vector.multi_reduction <add>, %11, %cst [0] : vector<2x8x128xf32> to vector<8x128xf32>
    %13 = vector.shape_cast %12 : vector<8x128xf32> to vector<1x8x128xf32>
    %14 = arith.addf %9, %13 : vector<1x8x128xf32>
    %c0_9 = arith.constant 0 : index
    %c0_10 = arith.constant 0 : index
    %c0_11 = arith.constant 0 : index
    %15 = vector.load %arg7[%c0_9, %c0_10, %c0_11] : memref<1x8x128xf32, #tpu.memory_space<vmem>>, vector<1x8x128xf32>
    tpu.vector_store %arg7[%c0_9, %c0_10, %c0_11], %14 {strides = array<i32>} : memref<1x8x128xf32, #tpu.memory_space<vmem>>, vector<1x8x128xf32>,
    %c0_12 = arith.constant 0 : index
    %c0_13 = arith.constant 0 : index
    %16 = vector.load %arg5[%c0_12, %c0_13] : memref<24x128xf32, #tpu.memory_space<vmem>>, vector<24x128xf32>
    %c0_14 = arith.constant 0 : index
    %c0_15 = arith.constant 0 : index
    %17 = vector.load %arg6[%c0_14, %c0_15] : memref<24x128xf32, #tpu.memory_space<vmem>>, vector<24x128xf32>
    %18 = arith.subf %16, %17 : vector<24x128xf32>
    %c0_16 = arith.constant 0 : index
    %c0_17 = arith.constant 0 : index
    %c0_18 = arith.constant 0 : index
    %19 = vector.load %arg8[%c0_16, %c0_17, %c0_18] : memref<1x8x128xf32, #tpu.memory_space<vmem>>, vector<1x8x128xf32>
    %20 = arith.mulf %18, %18 : vector<24x128xf32>
    %21 = vector.shape_cast %20 : vector<24x128xf32> to vector<3x8x128xf32>
    %cst_19 = arith.constant dense<0.000000e+00> : vector<8x128xf32>
    %22 = vector.multi_reduction <add>, %21, %cst_19 [0] : vector<3x8x128xf32> to vector<8x128xf32>
    %23 = vector.shape_cast %22 : vector<8x128xf32> to vector<1x8x128xf32>
    %24 = arith.addf %19, %23 : vector<1x8x128xf32>
    %c0_20 = arith.constant 0 : index
    %c0_21 = arith.constant 0 : index
    %c0_22 = arith.constant 0 : index
    %25 = vector.load %arg8[%c0_20, %c0_21, %c0_22] : memref<1x8x128xf32, #tpu.memory_space<vmem>>, vector<1x8x128xf32>
    tpu.vector_store %arg8[%c0_20, %c0_21, %c0_22], %24 {strides = array<i32>} : memref<1x8x128xf32, #tpu.memory_space<vmem>>, vector<1x8x128xf32>,
    return
  }
  func.func @transform_0(%arg0: i32, %arg1: i32) -> (i32, i32) {
    %c1_i32 = arith.constant 1 : i32
    %0 = arith.muli %arg0, %c1_i32 : i32
    %1 = arith.addi %0, %arg1 : i32
    %c0_i32 = arith.constant 0 : i32
    %c0_i32_0 = arith.constant 0 : i32
    return %1, %c0_i32 : i32, i32
  }
  func.func @transform_1(%arg0: i32, %arg1: i32) -> (i32, i32) {
    %c1_i32 = arith.constant 1 : i32
    %0 = arith.muli %arg0, %c1_i32 : i32
    %1 = arith.addi %0, %arg1 : i32
    %c0_i32 = arith.constant 0 : i32
    %c0_i32_0 = arith.constant 0 : i32
    return %1, %c0_i32 : i32, i32
  }
  func.func @transform_2(%arg0: i32, %arg1: i32) -> (i32, i32) {
    %c1_i32 = arith.constant 1 : i32
    %0 = arith.muli %arg0, %c1_i32 : i32
    %1 = arith.addi %0, %arg1 : i32
    %c0_i32 = arith.constant 0 : i32
    %c0_i32_0 = arith.constant 0 : i32
    return %1, %c0_i32 : i32, i32
  }
  func.func @transform_3(%arg0: i32, %arg1: i32) -> (i32, i32) {
    %c1_i32 = arith.constant 1 : i32
    %0 = arith.muli %arg0, %c1_i32 : i32
    %1 = arith.addi %0, %arg1 : i32
    %c0_i32 = arith.constant 0 : i32
    %c0_i32_0 = arith.constant 0 : i32
    return %1, %c0_i32 : i32, i32
  }
  func.func @transform_4(%arg0: i32, %arg1: i32) -> (i32, i32) {
    %c1_i32 = arith.constant 1 : i32
    %0 = arith.muli %arg0, %c1_i32 : i32
    %1 = arith.addi %0, %arg1 : i32
    %c0_i32 = arith.constant 0 : i32
    %c0_i32_0 = arith.constant 0 : i32
    return %1, %c0_i32 : i32, i32
  }
  func.func @transform_5(%arg0: i32, %arg1: i32) -> (i32, i32, i32) {
    %c0_i32 = arith.constant 0 : i32
    %c0_i32_0 = arith.constant 0 : i32
    %c0_i32_1 = arith.constant 0 : i32
    return %arg0, %c0_i32, %c0_i32_0 : i32, i32, i32
  }
  func.func @transform_6(%arg0: i32, %arg1: i32) -> (i32, i32, i32) {
    %c0_i32 = arith.constant 0 : i32
    %c0_i32_0 = arith.constant 0 : i32
    %c0_i32_1 = arith.constant 0 : i32
    return %arg0, %c0_i32, %c0_i32_0 : i32, i32, i32
  }
}

</mosaic_0001>

<bundles_post_ra>
// kernel: tpu_custom_call.1
= control target key start
LH: loop header
LB: loop body
LE: loop exit
PB: predicated region body
PF: predicated region fallthrough
CT: control target
= control target key end

     0   :  { %12 = vsyncpa [#allocation3], 0  ;;  %s525_s0 = inlined_call_operand.hbm [shape: f32[16,128], index: 0, kind: input, shape index: {}]   ;;  %s526_s1 = inlined_call_operand.hbm [shape: f32[16,128], index: 1, kind: input, shape index: {}]   ;;  %s527_s2 = inlined_call_operand.hbm [shape: f32[16,128], index: 2, kind: input, shape index: {}]   ;;  %s528_s3 = inlined_call_operand.hbm [shape: f32[24,128], index: 3, kind: input, shape index: {}]   ;;  %s529_s4 = inlined_call_operand.hbm [shape: f32[24,128], index: 4, kind: input, shape index: {}]   ;;  %s530_s5 = inlined_call_operand.hbm [shape: f32[1,8,128], index: 5, kind: output, shape index: {0}]   ;;  %s531_s6 = inlined_call_operand.hbm [shape: f32[1,8,128], index: 6, kind: output, shape index: {1}]  }
   0x1   :  { %13 = vsyncpa [#allocation6], 0 }
   0x2   :  { %14 = vsyncpa [#allocation9], 0 }
   0x3   :  { %15 = vsyncpa [#allocation4], 0 }
   0x4   :  { %16 = vsyncpa [#allocation13], 0  ;;  %s368_s21 = smov [#allocation5]   ;;  %s369_s23 = smov [#allocation8]  }
   0x5   :  { %s42_s22 = sshll.u32 %s368_s21, 4  ;;  %s74_s24 = sshll.u32 %s369_s23, 4  ;;  %s43_s22 = int_to_ptr.vmem [resolvable:$true] %s42_s22  ;;  %s412_s24 = int_to_ptr.vmem [resolvable:$true] %s74_s24 }
   0x6   :  { %s204_s27 = scalar_lea.hbm %s526_s1, 256 }
   0x7   :  { %p205_p0 = scmp.ne.s32.totalorder %s526_s1, %s204_s27  ;;  %p208_p1 = scmp.lt.u32.totalorder %s204_s27, %s526_s1 }
   0x9   :  { %p210_p2 = pnand %p208_p1, %p205_p0 }
   0xb   :  { %213 = shalt.err (!%p210_p2)
}
   0xc   :  { %s214_s8 = scalar_lea.vmem %s43_s22, 256  ;;  %p219_p4 = scmp.lt.s32.totalorder %s43_s22, %s43_s22 }
   0xd   :  { %p215_p3 = scmp.ne.s32.totalorder %s43_s22, %s214_s8  ;;  %p220_p5 = scmp.lt.s32.totalorder %s214_s8, %s214_s8 }
   0xf   :  { %p221_p6 = por %p220_p5, %p219_p4 }
  0x11   :  { %p222_p7 = pnand %p221_p6, %p215_p3 }
  0x13   :  { %225 = shalt.err (!%p222_p7)
}
  0x14   :  { %s370_s9 = smov 128   ;;  %s371_s10 = smov 8  }
  0x15   :  { %48 = dma.hbm_to_vmem [thread:$0]  %s526_s1, 256, %s43_s22, [#allocation6], %s370_s9, %s370_s9, %s371_s10  }
  0x16   :  { %s226_s15 = scalar_lea.hbm %s528_s3, 384 }
  0x17   :  { %p227_p8 = scmp.ne.s32.totalorder %s528_s3, %s226_s15  ;;  %p230_p9 = scmp.lt.u32.totalorder %s226_s15, %s528_s3 }
  0x19   :  { %p232_p10 = pnand %p230_p9, %p227_p8 }
  0x1b   :  { %235 = shalt.err (!%p232_p10)
}
  0x1c   :  { %s236_s20 = scalar_lea.vmem %s412_s24, 384  ;;  %p241_p12 = scmp.lt.s32.totalorder %s412_s24, %s412_s24 }
  0x1d   :  { %p237_p11 = scmp.ne.s32.totalorder %s412_s24, %s236_s20  ;;  %p242_p13 = scmp.lt.s32.totalorder %s236_s20, %s236_s20 }
  0x1f   :  { %p243_p0 = por %p242_p13, %p241_p12 }
  0x21   :  { %p244_p1 = pnand %p243_p0, %p237_p11 }
  0x23   :  { %247 = shalt.err (!%p244_p1)
}
  0x24   :  { %80 = dma.hbm_to_vmem [thread:$0]  %s528_s3, 384, %s412_s24, [#allocation9], %s370_s9, %s370_s9, %s371_s10  }
  0x25   :  { %s372_s22 = smov [#allocation2]   ;;  %s373_s25 = smov [#allocation7]  }
  0x26   :  { %s26_s23 = sshll.u32 %s372_s22, 4  ;;  %s58_s26 = sshll.u32 %s373_s25, 4  ;;  %s27_s23 = int_to_ptr.vmem [resolvable:$true] %s26_s23  ;;  %s449_s26 = int_to_ptr.vmem [resolvable:$true] %s58_s26 }
  0x27   :  { %s248_s29 = scalar_lea.hbm %s525_s0, 256 }
  0x28   :  { %p249_p2 = scmp.ne.s32.totalorder %s525_s0, %s248_s29  ;;  %p252_p3 = scmp.lt.u32.totalorder %s248_s29, %s525_s0 }
  0x2a   :  { %p254_p4 = pnand %p252_p3, %p249_p2 }
  0x2c   :  { %257 = shalt.err (!%p254_p4)
}
  0x2d   :  { %s258_s3 = scalar_lea.vmem %s27_s23, 256  ;;  %p263_p6 = scmp.lt.s32.totalorder %s27_s23, %s27_s23 }
  0x2e   :  { %p259_p5 = scmp.ne.s32.totalorder %s27_s23, %s258_s3  ;;  %p264_p7 = scmp.lt.s32.totalorder %s258_s3, %s258_s3 }
  0x30   :  { %p265_p8 = por %p264_p7, %p263_p6 }
  0x32   :  { %p266_p9 = pnand %p265_p8, %p259_p5 }
  0x34   :  { %269 = shalt.err (!%p266_p9)
}
  0x35   :  { %32 = dma.hbm_to_vmem [thread:$0]  %s525_s0, 256, %s27_s23, [#allocation3], %s370_s9, %s370_s9, %s371_s10  }
  0x36   :  { %s270_s15 = scalar_lea.hbm %s527_s2, 256 }
  0x37   :  { %p271_p10 = scmp.ne.s32.totalorder %s527_s2, %s270_s15  ;;  %p274_p11 = scmp.lt.u32.totalorder %s270_s15, %s527_s2 }
  0x39   :  { %p276_p12 = pnand %p274_p11, %p271_p10 }
  0x3b   :  { %279 = shalt.err (!%p276_p12)
}
  0x3c   :  { %s280_s20 = scalar_lea.vmem %s449_s26, 256  ;;  %p285_p0 = scmp.lt.s32.totalorder %s449_s26, %s449_s26 }
  0x3d   :  { %p281_p13 = scmp.ne.s32.totalorder %s449_s26, %s280_s20  ;;  %p286_p1 = scmp.lt.s32.totalorder %s280_s20, %s280_s20 }
  0x3f   :  { %p287_p2 = por %p286_p1, %p285_p0 }
  0x41   :  { %p288_p3 = pnand %p287_p2, %p281_p13 }
  0x43   :  { %291 = shalt.err (!%p288_p3)
}
  0x44   :  { %64 = dma.hbm_to_vmem [thread:$0]  %s527_s2, 256, %s449_s26, [#allocation6], %s370_s9, %s370_s9, %s371_s10  }
  0x45   :  { %s374_s21 = smov [#allocation10]   ;;  %s292_s27 = scalar_lea.hbm %s529_s4, 384 }
  0x46   :  { %s90_s22 = sshll.u32 %s374_s21, 4  ;;  %p293_p4 = scmp.ne.s32.totalorder %s529_s4, %s292_s27  ;;  %s91_s22 = int_to_ptr.vmem [resolvable:$true] %s90_s22 }
  0x47   :  { %p296_p5 = scmp.lt.u32.totalorder %s292_s27, %s529_s4 }
  0x49   :  { %p298_p6 = pnand %p296_p5, %p293_p4 }
  0x4b   :  { %301 = shalt.err (!%p298_p6)
}
  0x4c   :  { %s302_s8 = scalar_lea.vmem %s91_s22, 384  ;;  %p307_p8 = scmp.lt.s32.totalorder %s91_s22, %s91_s22 }
  0x4d   :  { %p303_p7 = scmp.ne.s32.totalorder %s91_s22, %s302_s8  ;;  %p308_p9 = scmp.lt.s32.totalorder %s302_s8, %s302_s8 }
  0x4f   :  { %p309_p10 = por %p308_p9, %p307_p8 }
  0x51   :  { %p310_p11 = pnand %p309_p10, %p303_p7 }
  0x53   :  { %313 = shalt.err (!%p310_p11)
}
  0x54   :  { %96 = dma.hbm_to_vmem [thread:$0]  %s529_s4, 384, %s91_s22, [#allocation9], %s370_s9, %s370_s9, %s371_s10  }
  0x55   :  { %358 = dma.done.wait [#allocation3], 256  }
  0x56   :  { %359 = vsyncadd [#allocation3], 4294967040 }
  0x57   :  { %360 = dma.done.wait [#allocation6], 512  }
  0x58   :  { %361 = vsyncadd [#allocation6], 4294966784 }
  0x59   :  { %362 = dma.done.wait [#allocation9], 768  }
  0x5a   :  { %363 = vsyncadd [#allocation9], 4294966528  ;;  %v128_v0 = vld [vmem:[#allocation2] sm:$0xff]  ;;  %v129_v1 = vld [vmem:[#allocation2 + $0x8] sm:$0xff]  ;;  %s375_s4 = smov [#allocation11]   ;;  %s376_s10 = smov [#allocation12]  }
  0x5b   :  { %v130_v2 = vld [vmem:[#allocation5] sm:$0xff]  ;;  %v131_v3 = vld [vmem:[#allocation5 + $0x8] sm:$0xff]  ;;  %v132_v4 = vld [vmem:[#allocation7] sm:$0xff]  ;;  %s169_s9 = sshll.u32 %s375_s4, 4  ;;  %s179_s11 = sshll.u32 %s376_s10, 4  ;;  %s170_s9 = int_to_ptr.vmem [resolvable:$true] %s169_s9  ;;  %s180_s11 = int_to_ptr.vmem [resolvable:$true] %s179_s11 }
  0x5c   :  { %v133_v5 = vld [vmem:[#allocation7 + $0x8] sm:$0xff]  ;;  %v134_v6 = vmul.f32 %v132_v4, %v128_v0  ;;  %v136_v8 = vmul.f32 %v132_v4, %v130_v2  ;;  %v146_v10 = vld [vmem:[#allocation8] sm:$0xff]  ;;  %v147_v11 = vld [vmem:[#allocation8 + $0x8] sm:$0xff]  ;;  %s314_s3 = scalar_lea.vmem %s170_s9, 128  ;;  %p319_p13 = scmp.lt.s32.totalorder %s170_s9, %s170_s9 }
  0x5d   :  { %v135_v7 = vmul.f32 %v133_v5, %v129_v1  ;;  %v137_v9 = vmul.f32 %v133_v5, %v131_v3  ;;  %v148_v12 = vld [vmem:[#allocation8 + $0x10] sm:$0xff]  ;;  %v149_v13 = vld [vmem:[#allocation10] sm:$0xff]  ;;  %v150_v14 = vld [vmem:[#allocation10 + $0x8] sm:$0xff]  ;;  %p315_p12 = scmp.ne.s32.totalorder %s170_s9, %s314_s3  ;;  %p320_p0 = scmp.lt.s32.totalorder %s314_s3, %s314_s3 }
  0x5e   :  { %v151_v15 = vld [vmem:[#allocation10 + $0x10] sm:$0xff]  ;;  %v138_v16 = vsub.f32 %v134_v6, %v136_v8  ;;  %v152_v18 = vsub.f32 %v146_v10, %v149_v13  ;;  %v153_v19 = vsub.f32 %v147_v11, %v150_v14 }
  0x5f   :  { %v139_v17 = vsub.f32 %v135_v7, %v137_v9  ;;  %v154_v20 = vsub.f32 %v148_v12, %v151_v15  ;;  %p321_p1 = por %p320_p0, %p319_p13 }
  0x60   :  { %v141_v21 = vmul.f32 %v138_v16, %v138_v16  ;;  %v156_v23 = vmul.f32 %v152_v18, %v152_v18  ;;  %v157_v24 = vmul.f32 %v153_v19, %v153_v19 }
  0x61   :  { %v142_v22 = vmul.f32 %v139_v17, %v139_v17  ;;  %v158_v25 = vmul.f32 %v154_v20, %v154_v20  ;;  %p322_p2 = pnand %p321_p1, %p315_p12 }
  0x62   :  { %v159_v27 = vadd.f32 %v157_v24, %v156_v23 }
  0x63   :  { %v143_v26 = vadd.f32 %v142_v22, %v141_v21 }
  0x64   :  { %v160_v28 = vadd.f32 %v159_v27, %v158_v25 }
  0x65   :  { %145 = vst [vmem:[#allocation11] sm:$0xff] %v143_v26 }
  0x66   :  { %325 = shalt.err (!%p322_p2)
}
  0x67   :  { %s326_s13 = scalar_lea.hbm %s530_s5, 128 }
  0x68   :  { %p327_p3 = scmp.ne.s32.totalorder %s530_s5, %s326_s13  ;;  %p330_p4 = scmp.lt.u32.totalorder %s326_s13, %s530_s5 }
  0x6a   :  { %p332_p5 = pnand %p330_p4, %p327_p3 }
  0x6c   :  { %335 = shalt.err (!%p332_p5)
}
  0x6d   :  { %172 = dma.vmem_to_hbm [thread:$0]  %s170_s9, 128, %s530_s5, [#allocation4]   ;;  %162 = vst [vmem:[#allocation12] sm:$0xff] %v160_v28 }
  0x6e   :  { %s336_s20 = scalar_lea.vmem %s180_s11, 128  ;;  %p341_p7 = scmp.lt.s32.totalorder %s180_s11, %s180_s11 }
  0x6f   :  { %p337_p6 = scmp.ne.s32.totalorder %s180_s11, %s336_s20  ;;  %p342_p8 = scmp.lt.s32.totalorder %s336_s20, %s336_s20 }
  0x71   :  { %p343_p9 = por %p342_p8, %p341_p7 }
  0x73   :  { %p344_p10 = pnand %p343_p9, %p337_p6 }
  0x75   :  { %347 = shalt.err (!%p344_p10)
}
  0x76   :  { %s348_s21 = scalar_lea.hbm %s531_s6, 128 }
  0x77   :  { %p349_p11 = scmp.ne.s32.totalorder %s531_s6, %s348_s21  ;;  %p352_p12 = scmp.lt.u32.totalorder %s348_s21, %s531_s6 }
  0x79   :  { %p354_p13 = pnand %p352_p12, %p349_p11 }
  0x7b   :  { %357 = shalt.err (!%p354_p13)
}
  0x7c   :  { %182 = dma.vmem_to_hbm [thread:$0]  %s180_s11, 128, %s531_s6, [#allocation13]  }
  0x7d   :  { %364 = dma.done.wait [#allocation4], 128  }
  0x7e   :  { %365 = vsyncadd [#allocation4], 4294967168 }
  0x7f   :  { %366 = dma.done.wait [#allocation13], 128  }
  0x80   :  { %367 = vsyncadd [#allocation13], 4294967168 }
  0x81   :  { %189 = vsyncpa [#allocation3], 1 }
  0x82   :  { %190 = vsyncpa [#allocation6], 1 }
  0x83   :  { %191 = vsyncpa [#allocation9], 1 }
  0x84   :  { %192 = vsyncpa [#allocation4], 1 }
  0x85   :  { %193 = vsyncpa [#allocation13], 1 }

</bundles_post_ra>
